<compile_context>
chip_gen: v6e
topology: v6e:2x2x1
jax: 0.10.0
libtpu: 0.0.40
codegen_flags: <defaults>
</compile_context>

<pallas_src>
import functools

import jax
import jax.numpy as jnp
from jax.experimental import pallas as pl
from jax.experimental.pallas import tpu as pltpu


# ----------------------------------------------------------------------------
# Fused kernel: one batch tile, three matmuls (actor and critic concatenated).
# ----------------------------------------------------------------------------
def _ppo_fused_kernel(s_ref, w1_ref, b1_ref, w2_ref, b2_ref, w3_ref, b3_ref,
                      out_ref):
    cdt = w1_ref.dtype                     # compute dtype fed to the MXU
    x = s_ref[...].astype(cdt)             # in-kernel cast (free: VPU slack)

    # layer 1: (TM, NOBS) @ (NOBS, 128)  -- actor half | critic half | zero pad
    h = jnp.dot(x, w1_ref[...], preferred_element_type=jnp.float32) + b1_ref[...]
    h = jnp.maximum(h, 0.0).astype(cdt)    # epilogue in f32, re-cast for next dot

    # layer 2: (TM, 128) @ blockdiag(aw2, cw2)
    h = jnp.dot(h, w2_ref[...], preferred_element_type=jnp.float32) + b2_ref[...]
    h = jnp.maximum(h, 0.0).astype(cdt)

    # layer 3: (TM, 128) @ (128, 128)  -> lane-dense output slab
    out = jnp.dot(h, w3_ref[...], preferred_element_type=jnp.float32) + b3_ref[...]
    out_ref[...] = out.astype(out_ref.dtype)


# ----------------------------------------------------------------------------
# Batch tile selection: big tiles (few grid steps) but >=2 (even) tiles so both
# v7x TensorCores get work. tm is kept a multiple of 8 (sublane) and capped so
# even v5e's 16 MiB scoped-VMEM default is never at risk.
# ----------------------------------------------------------------------------
def _pick_batch_tile(batch, *, max_tm=1024, min_tiles=2):
    n_tiles = max(min_tiles, -(-batch // max_tm))
    n_tiles += n_tiles % 2                 # even tile count -> balanced on 2 TCs
    tm = -(-batch // n_tiles)              # cdiv
    tm = ((tm + 7) // 8) * 8               # sublane (8) multiple
    return max(tm, 8)


# ----------------------------------------------------------------------------
# Wrapper: batch-tiled pallas_call with VMEM-resident fused weights.
# ----------------------------------------------------------------------------
@functools.partial(jax.jit, static_argnames=("nact", "tm", "out_dtype"))
def ppo_forward(state, packed_params, *, nact, tm=None, out_dtype=jnp.float32):
    """Returns (actor_logits [B, nact], values [B, 1])."""
    w1, b1, w2, b2, w3, b3 = packed_params
    B, nobs = state.shape
    h2 = w1.shape[1]          # fused (padded) hidden width, lane-dense (128)
    out_pad = w3.shape[1]     # 128 (lane-dense output slab)

    if tm is None:
        tm = _pick_batch_tile(B)
    n_tiles = pl.cdiv(B, tm)  # partial final block handled by Pallas (no jnp.pad)

    pinned = lambda i: (0, 0)  # weights/biases: same block every step (resident)

    out = pl.pallas_call(
        _ppo_fused_kernel,
        out_shape=jax.ShapeDtypeStruct((B, out_pad), out_dtype),
        grid_spec=pltpu.PrefetchScalarGridSpec(
            num_scalar_prefetch=0,
            grid=(n_tiles,),
            in_specs=[
                pl.BlockSpec((tm, nobs), lambda i: (i, 0)),     # state tile (f32)
                pl.BlockSpec((nobs, h2), pinned),               # W1 fused
                pl.BlockSpec((1, h2), pinned),                  # b1 fused
                pl.BlockSpec((h2, h2), pinned),                 # W2 block-diag
                pl.BlockSpec((1, h2), pinned),                  # b2 fused
                pl.BlockSpec((h2, out_pad), pinned),            # W3 padded to 128
                pl.BlockSpec((1, out_pad), pinned),             # b3 padded
            ],
            out_specs=pl.BlockSpec((tm, out_pad), lambda i: (i, 0)),
        ),
        compiler_params=pltpu.CompilerParams(
            dimension_semantics=("parallel",)),                 # 2 TCs on v7x
    )(state, w1, b1, w2, b2, w3, b3)

    logits = out[:, :nact]
    values = out[:, nact:nact + 1]
    return logits, values


# ----------------------------------------------------------------------------
# One-time parameter packing: fuse actor + critic into 3 weight/bias pairs,
# padding the fused hidden width up to a lane-dense 128.
# ----------------------------------------------------------------------------
def pack_params(actor_params, critic_params, nact, *, out_pad=128,
                dtype=jnp.float32):
    aw1, ab1, aw2, ab2, aw3, ab3 = actor_params
    cw1, cb1, cw2, cb2, cw3, cb3 = critic_params
    nobs, hid = aw1.shape
    h2 = 2 * hid
    h2_pad = max(128, ((h2 + 127) // 128) * 128)   # lane-dense fused hidden width
    assert nact + 1 <= out_pad

    w1 = jnp.zeros((nobs, h2_pad), jnp.float32)
    w1 = w1.at[:, :hid].set(aw1).at[:, hid:h2].set(cw1)
    b1 = jnp.zeros((1, h2_pad), jnp.float32)
    b1 = b1.at[:, :hid].set(ab1).at[:, hid:h2].set(cb1)

    w2 = jnp.zeros((h2_pad, h2_pad), jnp.float32)
    w2 = w2.at[:hid, :hid].set(aw2).at[hid:h2, hid:h2].set(cw2)   # block-diag
    b2 = jnp.zeros((1, h2_pad), jnp.float32)
    b2 = b2.at[:, :hid].set(ab2).at[:, hid:h2].set(cb2)

    w3 = jnp.zeros((h2_pad, out_pad), jnp.float32)
    w3 = w3.at[:hid, :nact].set(aw3).at[hid:h2, nact:nact + 1].set(cw3)
    b3 = jnp.zeros((1, out_pad), jnp.float32)
    b3 = b3.at[:, :nact].set(ab3).at[:, nact:nact + 1].set(cb3)

    # Weights in compute dtype (f32, or bf16 for the v6e/v7x MXU fast path);
    # biases stay f32 so the bias-add + ReLU epilogue runs in f32.
    return (w1.astype(dtype), b1, w2.astype(dtype), b2, w3.astype(dtype), b3)


# ----------------------------------------------------------------------------
# Deterministic parameter init (mirrors layer_init: orthogonal * std, zero bias),
# weights produced in (in, out) layout.
# ----------------------------------------------------------------------------
def _orthogonal(key, n_in, n_out, std):
    a = jax.random.normal(key, (max(n_in, n_out), min(n_in, n_out)), jnp.float32)
    q, r = jnp.linalg.qr(a)
    q = q * jnp.sign(jnp.diagonal(r))[None, :]
    w_out_in = q if (n_out, n_in) == q.shape else q.T              # (n_out, n_in)
    return (std * w_out_in).T.astype(jnp.float32)                  # (n_in, n_out)


def init_mlp(key, dims, stds):
    keys = jax.random.split(key, len(dims) - 1)
    params = []
    for k, d_in, d_out, std in zip(keys, dims[:-1], dims[1:], stds):
        params.append(_orthogonal(k, d_in, d_out, std))
        params.append(jnp.zeros((1, d_out), jnp.float32))
    return tuple(params)


# ----------------------------------------------------------------------------
# Pure-JAX reference (unfused) for correctness checks.
# ----------------------------------------------------------------------------
def ppo_forward_ref(state, actor_params, critic_params):
    def mlp(x, p):
        w1, b1, w2, b2, w3, b3 = p
        h = jnp.maximum(x @ w1 + b1, 0.0)
        h = jnp.maximum(h @ w2 + b2, 0.0)
        return h @ w3 + b3
    return mlp(state, actor_params), mlp(state, critic_params)


if __name__ == "__main__":
    NOBS, HID, NACT = 32, 32, 4

    key = jax.random.PRNGKey(0)
    k_state, k_actor, k_critic, k_small = jax.random.split(key, 4)

    sqrt2 = 2.0 ** 0.5
    actor_params = init_mlp(k_actor, [NOBS, HID, HID, NACT], [sqrt2, sqrt2, 0.01])
    critic_params = init_mlp(k_critic, [NOBS, HID, HID, 1], [sqrt2, sqrt2, 1.0])
    # TODO(synk): actor_logstd / Normal sampling, log_prob, entropy of
    # sample_action_and_value are distribution ops outside forward(); not ported.
    # Fusing that log-prob/sampling epilogue into this kernel (so only ~nact+1
    # useful columns are written) is the next end-to-end win.

    packed_f32 = pack_params(actor_params, critic_params, NACT, dtype=jnp.float32)
    packed_bf16 = pack_params(actor_params, critic_params, NACT, dtype=jnp.bfloat16)

    # ---- rollout-sized batch, f32 (tight check); tile auto-picked ------------
    state = jax.random.normal(k_state, (256, NOBS), jnp.float32)
    logits, values = ppo_forward(state, packed_f32, nact=NACT)
    jax.block_until_ready((logits, values))
    ref_logits, ref_values = ppo_forward_ref(state, actor_params, critic_params)
    assert logits.shape == (256, NACT) and values.shape == (256, 1)
    assert jnp.allclose(logits, ref_logits, atol=1e-5, rtol=1e-5)
    assert jnp.allclose(values, ref_values, atol=1e-5, rtol=1e-5)

    # ---- ragged batch: exercises the partial final block (no jnp.pad) --------
    state_small = jax.random.normal(k_small, (40, NOBS), jnp.float32)
    logits_s, values_s = ppo_forward(state_small, packed_f32, nact=NACT)
    jax.block_until_ready((logits_s, values_s))
    ref_ls, ref_vs = ppo_forward_ref(state_small, actor_params, critic_params)
    assert logits_s.shape == (40, NACT) and values_s.shape == (40, 1)
    assert jnp.allclose(logits_s, ref_ls, atol=1e-5, rtol=1e-5)
    assert jnp.allclose(values_s, ref_vs, atol=1e-5, rtol=1e-5)

    # ---- bf16 weights + bf16 output slab (halves writeback), loose check -----
    logits_bf, values_bf = ppo_forward(state, packed_bf16, nact=NACT,
                                       out_dtype=jnp.bfloat16)
    jax.block_until_ready((logits_bf, values_bf))
    assert jnp.allclose(logits_bf.astype(jnp.float32), ref_logits,
                        atol=1e-1, rtol=1e-1)
    assert jnp.allclose(values_bf.astype(jnp.float32), ref_values,
                        atol=1e-1, rtol=1e-1)

    print("KERNEL_OK")
</pallas_src>

<mosaic_0001>
module attributes {stable_mosaic.version = 11 : i64} {
  func.func @_ppo_fused_kernel(%arg0: i32, %arg1: memref<128x32xf32, #tpu.memory_space<vmem>>, %arg2: memref<32x128xf32, #tpu.memory_space<vmem>>, %arg3: memref<1x128xf32, #tpu.memory_space<vmem>>, %arg4: memref<128x128xf32, #tpu.memory_space<vmem>>, %arg5: memref<1x128xf32, #tpu.memory_space<vmem>>, %arg6: memref<128x128xf32, #tpu.memory_space<vmem>>, %arg7: memref<1x128xf32, #tpu.memory_space<vmem>>, %arg8: memref<128x128xf32, #tpu.memory_space<vmem>>) attributes {dimension_semantics = [#tpu.dimension_semantics<parallel>], iteration_bounds = array<i64: 2>, scalar_prefetch = 0 : i64, scratch_operands = 0 : i64, tpu.core_type = #tpu.core_type<tc>, window_params = [{transform_indices = @transform_0, window_bounds = array<i64: 128, 32>}, {pipeline_mode = #tpu.pipeline_mode<synchronous>, transform_indices = @transform_1, window_bounds = array<i64: 32, 128>}, {pipeline_mode = #tpu.pipeline_mode<synchronous>, transform_indices = @transform_2, window_bounds = array<i64: 1, 128>}, {pipeline_mode = #tpu.pipeline_mode<synchronous>, transform_indices = @transform_3, window_bounds = array<i64: 128, 128>}, {pipeline_mode = #tpu.pipeline_mode<synchronous>, transform_indices = @transform_4, window_bounds = array<i64: 1, 128>}, {pipeline_mode = #tpu.pipeline_mode<synchronous>, transform_indices = @transform_5, window_bounds = array<i64: 128, 128>}, {pipeline_mode = #tpu.pipeline_mode<synchronous>, transform_indices = @transform_6, window_bounds = array<i64: 1, 128>}, {transform_indices = @transform_7, window_bounds = array<i64: 128, 128>}]} {
    %c0 = arith.constant 0 : index
    %c0_0 = arith.constant 0 : index
    %0 = vector.load %arg1[%c0, %c0_0] : memref<128x32xf32, #tpu.memory_space<vmem>>, vector<128x32xf32>
    %c0_1 = arith.constant 0 : index
    %c0_2 = arith.constant 0 : index
    %1 = vector.load %arg2[%c0_1, %c0_2] : memref<32x128xf32, #tpu.memory_space<vmem>>, vector<32x128xf32>
    %cst = arith.constant dense<0.000000e+00> : vector<128x128xf32>
    %2 = tpu.matmul %0, %1, %cst {dimension_numbers = #tpu.dot_dimension_numbers<[1], [0], [0], [1], [0, 0, 1, 1], [], []>} : vector<128x32xf32>, vector<32x128xf32>, vector<128x128xf32> -> vector<128x128xf32>
    %c0_3 = arith.constant 0 : index
    %c0_4 = arith.constant 0 : index
    %3 = vector.load %arg3[%c0_3, %c0_4] : memref<1x128xf32, #tpu.memory_space<vmem>>, vector<1x128xf32>
    %4 = vector.broadcast %3 : vector<1x128xf32> to vector<128x128xf32>
    %5 = arith.addf %2, %4 : vector<128x128xf32>
    %cst_5 = arith.constant 0.000000e+00 : f32
    %6 = vector.broadcast %cst_5 : f32 to vector<128x128xf32>
    %7 = arith.maximumf %5, %6 : vector<128x128xf32>
    %c0_6 = arith.constant 0 : index
    %c0_7 = arith.constant 0 : index
    %8 = vector.load %arg4[%c0_6, %c0_7] : memref<128x128xf32, #tpu.memory_space<vmem>>, vector<128x128xf32>
    %cst_8 = arith.constant dense<0.000000e+00> : vector<128x128xf32>
    %9 = tpu.matmul %7, %8, %cst_8 {dimension_numbers = #tpu.dot_dimension_numbers<[1], [0], [0], [1], [0, 0, 1, 1], [], []>} : vector<128x128xf32>, vector<128x128xf32>, vector<128x128xf32> -> vector<128x128xf32>
    %c0_9 = arith.constant 0 : index
    %c0_10 = arith.constant 0 : index
    %10 = vector.load %arg5[%c0_9, %c0_10] : memref<1x128xf32, #tpu.memory_space<vmem>>, vector<1x128xf32>
    %11 = vector.broadcast %10 : vector<1x128xf32> to vector<128x128xf32>
    %12 = arith.addf %9, %11 : vector<128x128xf32>
    %cst_11 = arith.constant 0.000000e+00 : f32
    %13 = vector.broadcast %cst_11 : f32 to vector<128x128xf32>
    %14 = arith.maximumf %12, %13 : vector<128x128xf32>
    %c0_12 = arith.constant 0 : index
    %c0_13 = arith.constant 0 : index
    %15 = vector.load %arg6[%c0_12, %c0_13] : memref<128x128xf32, #tpu.memory_space<vmem>>, vector<128x128xf32>
    %cst_14 = arith.constant dense<0.000000e+00> : vector<128x128xf32>
    %16 = tpu.matmul %14, %15, %cst_14 {dimension_numbers = #tpu.dot_dimension_numbers<[1], [0], [0], [1], [0, 0, 1, 1], [], []>} : vector<128x128xf32>, vector<128x128xf32>, vector<128x128xf32> -> vector<128x128xf32>
    %c0_15 = arith.constant 0 : index
    %c0_16 = arith.constant 0 : index
    %17 = vector.load %arg7[%c0_15, %c0_16] : memref<1x128xf32, #tpu.memory_space<vmem>>, vector<1x128xf32>
    %18 = vector.broadcast %17 : vector<1x128xf32> to vector<128x128xf32>
    %19 = arith.addf %16, %18 : vector<128x128xf32>
    %c0_17 = arith.constant 0 : index
    %c0_18 = arith.constant 0 : index
    %20 = vector.load %arg8[%c0_17, %c0_18] : memref<128x128xf32, #tpu.memory_space<vmem>>, vector<128x128xf32>
    tpu.vector_store %arg8[%c0_17, %c0_18], %19 {strides = array<i32>} : memref<128x128xf32, #tpu.memory_space<vmem>>, vector<128x128xf32>,
    return
  }
  func.func @transform_0(%arg0: i32) -> (i32, i32) {
    %c0_i32 = arith.constant 0 : i32
    %c0_i32_0 = arith.constant 0 : i32
    return %arg0, %c0_i32 : i32, i32
  }
  func.func @transform_1(%arg0: i32) -> (i32, i32) {
    %c0_i32 = arith.constant 0 : i32
    %c0_i32_0 = arith.constant 0 : i32
    %c0_i32_1 = arith.constant 0 : i32
    return %c0_i32, %c0_i32_0 : i32, i32
  }
  func.func @transform_2(%arg0: i32) -> (i32, i32) {
    %c0_i32 = arith.constant 0 : i32
    %c0_i32_0 = arith.constant 0 : i32
    %c0_i32_1 = arith.constant 0 : i32
    return %c0_i32, %c0_i32_0 : i32, i32
  }
  func.func @transform_3(%arg0: i32) -> (i32, i32) {
    %c0_i32 = arith.constant 0 : i32
    %c0_i32_0 = arith.constant 0 : i32
    %c0_i32_1 = arith.constant 0 : i32
    return %c0_i32, %c0_i32_0 : i32, i32
  }
  func.func @transform_4(%arg0: i32) -> (i32, i32) {
    %c0_i32 = arith.constant 0 : i32
    %c0_i32_0 = arith.constant 0 : i32
    %c0_i32_1 = arith.constant 0 : i32
    return %c0_i32, %c0_i32_0 : i32, i32
  }
  func.func @transform_5(%arg0: i32) -> (i32, i32) {
    %c0_i32 = arith.constant 0 : i32
    %c0_i32_0 = arith.constant 0 : i32
    %c0_i32_1 = arith.constant 0 : i32
    return %c0_i32, %c0_i32_0 : i32, i32
  }
  func.func @transform_6(%arg0: i32) -> (i32, i32) {
    %c0_i32 = arith.constant 0 : i32
    %c0_i32_0 = arith.constant 0 : i32
    %c0_i32_1 = arith.constant 0 : i32
    return %c0_i32, %c0_i32_0 : i32, i32
  }
  func.func @transform_7(%arg0: i32) -> (i32, i32) {
    %c0_i32 = arith.constant 0 : i32
    %c0_i32_0 = arith.constant 0 : i32
    return %arg0, %c0_i32 : i32, i32
  }
}

</mosaic_0001>

<bundles_post_ra>
// kernel: ppo_forward.1
= control target key start
LH: loop header
LB: loop body
LE: loop exit
PB: predicated region body
PF: predicated region fallthrough
CT: control target
= control target key end

     0   :  { %s1289_s24 = smov 0   ;;  %s1548_s0 = inlined_call_operand.vmem [shape: f32[256,32], index: 0, kind: input, shape index: {}]   ;;  %s1549_s1 = inlined_call_operand.vmem [shape: f32[32,128], index: 1, kind: input, shape index: {}]   ;;  %s1550_s2 = inlined_call_operand.vmem [shape: f32[1,128], index: 2, kind: input, shape index: {}]   ;;  %s1551_s3 = inlined_call_operand.vmem [shape: f32[128,128], index: 3, kind: input, shape index: {}]   ;;  %s1552_s4 = inlined_call_operand.vmem [shape: f32[1,128], index: 4, kind: input, shape index: {}]   ;;  %s1553_s5 = inlined_call_operand.vmem [shape: f32[128,128], index: 5, kind: input, shape index: {}]   ;;  %s1554_s6 = inlined_call_operand.vmem [shape: f32[1,128], index: 6, kind: input, shape index: {}]   ;;  %s1555_s7 = inlined_call_operand.vmem [shape: f32[256,128], index: 7, kind: output, shape index: {}]  }
   0x1 LB: > { %s943_s25 = sadd.s32 4294967295, %s1247_s24   ;;  %p947_p0 = scmp.ge.s32.totalorder %s1247_s24, 1  ;;  %s1247_s24 = sphi %s1289_s24, %s17_s24  }
   0x2   : > { %p238_p1 = scmp.lt.s32.totalorder %s1247_s24, 3 }
   0x4   : > { %p239_p2 = pnand %p947_p0, %p238_p1 }
   0x5   : > { %s948_s30 = sshll.u32 (!%p239_p2), %s943_s25, 4 }
   0x6   : > { %242 = sbr.rel (%p239_p2) target bundleno = 646 (0x286), region = 48  ;;  %p271_p3 = scmp.lt.s32.totalorder (!%p239_p2), %s948_s30, 31 }
   0xb   : > { %v301_v0 = vld [vmem:[%s1549_s1 + $0x18] sm:$0xff]  ;;  %v300_v1 = vld [vmem:[%s1549_s1 + $0x10] sm:$0xff]  ;;  %v299_v4 = vld [vmem:[%s1549_s1 + $0x8] sm:$0xff]  ;;  %s1557_s30 = smov (!%p271_p3, %s948_s30), 31  ;;  %vm309_vm0 = vcmask 261120  }
   0xc   : > { %1057 = vmatprep.subr.mxu0 %v301_v0  ;;  %v534_v2 = vld [vmem:[%s1551_s3 + $0x78] sm:$0xff]  ;;  %v533_v3 = vld [vmem:[%s1551_s3 + $0x70] sm:$0xff]  ;;  %v532_v5 = vld [vmem:[%s1551_s3 + $0x68] sm:$0xff]  ;;  %s949_s18 = sshll.u32 %s1557_s30, 3 }
   0xd   : > { %1058 = vmatpush3.msra.mxu0 %v301_v0  ;;  %1089 = vmatprep.subr.mxu1 %v534_v2  ;;  %v298_v6 = vld [vmem:[%s1549_s1] sm:$0xff]  ;;  %s1326_s21 = scalar_lea.vmem %s1548_s0, %s949_s18  ;;  %v530_v11 = vld [vmem:[%s1551_s3 + $0x58] sm:$0xff]  ;;  %v529_v13 = vld [vmem:[%s1551_s3 + $0x50] sm:$0xff]  ;;  %s1527_s29 = scalar_lea.vmem %s1555_s7, %s949_s18 }
   0xe   : > { %1059 = vmatprep.subr.mxu0 %v300_v1  ;;  %1090 = vmatpush3.msra.mxu1 %v534_v2  ;;  %v531_v7 = vld [vmem:[%s1551_s3 + $0x60] sm:$0xff]  ;;  %v283_v9 = vld [vmem:[%s1326_s21 + $0x8] sm:$0xff]  ;;  %v284_v10 = vld [vmem:[%s1326_s21 + $0x10] sm:$0xff] }
   0xf   : > { %1060 = vmatpush3.msra.mxu0 %v300_v1  ;;  %1091 = vmatprep.subr.mxu1 %v533_v3  ;;  %v282_v8 = vld [vmem:[%s1326_s21] sm:$0xff]  ;;  %v285_v12 = vld [vmem:[%s1326_s21 + $0x18] sm:$0xff]  ;;  %v528_v15 = vld [vmem:[%s1551_s3 + $0x48] sm:$0xff] }
  0x10   : > { %1061 = vmatprep.subr.mxu0 %v299_v4  ;;  %1092 = vmatpush3.msra.mxu1 %v533_v3  ;;  %v286_v14 = vld [vmem:[%s1326_s21 + $0x20] sm:$0xff]  ;;  %v287_v16 = vld [vmem:[%s1326_s21 + $0x28] sm:$0xff]  ;;  %v288_v18 = vld [vmem:[%s1326_s21 + $0x30] sm:$0xff] }
  0x11   : > { %1062 = vmatpush3.msra.mxu0 %v299_v4  ;;  %1093 = vmatprep.subr.mxu1 %v532_v5  ;;  %v527_v17 = vld [vmem:[%s1551_s3 + $0x40] sm:$0xff]  ;;  %v526_v19 = vld [vmem:[%s1551_s3 + $0x38] sm:$0xff]  ;;  %v525_v21 = vld [vmem:[%s1551_s3 + $0x30] sm:$0xff] }
  0x12   : > { %1063 = vmatprep.subr.mxu0 %v298_v6  ;;  %1094 = vmatpush3.msra.mxu1 %v532_v5  ;;  %v289_v20 = vld [vmem:[%s1326_s21 + $0x38] sm:$0xff]  ;;  %v290_v22 = vld [vmem:[%s1326_s21 + $0x40] sm:$0xff]  ;;  %v524_v23 = vld [vmem:[%s1551_s3 + $0x28] sm:$0xff] }
  0x13   : > { %1064 = vmatpush3.msra.mxu0 %v298_v6  ;;  %1065 = vmatprep.mubr.msk.f32.mxu0 %vm309_vm0, %v282_v8  ;;  %v291_v24 = vld [vmem:[%s1326_s21 + $0x48] sm:$0xff]  ;;  %v523_v25 = vld [vmem:[%s1551_s3 + $0x20] sm:$0xff]  ;;  %v292_v26 = vld [vmem:[%s1326_s21 + $0x50] sm:$0xff] }
  0x14   : > { %1066 = vmatmul.mubr.msk.f32.vlgmr.msra.gmra.mxu0 %vm309_vm0, %v283_v9  ;;  %1095 = vmatprep.subr.mxu1 %v531_v7  ;;  %v293_v27 = vld [vmem:[%s1326_s21 + $0x58] sm:$0xff]  ;;  %v294_v28 = vld [vmem:[%s1326_s21 + $0x60] sm:$0xff]  ;;  %v295_v29 = vld [vmem:[%s1326_s21 + $0x68] sm:$0xff] }
  0x15   : > { %1068 = vmatprep.mubr.msk.f32.mxu0 %vm309_vm0, %v284_v10  ;;  %1096 = vmatpush3.msra.mxu1 %v531_v7  ;;  %v296_v30 = vld [vmem:[%s1326_s21 + $0x70] sm:$0xff]  ;;  %v297_v31 = vld [vmem:[%s1326_s21 + $0x78] sm:$0xff]  ;;  %v520_v34 = vld [vmem:[%s1551_s3 + $0x8] sm:$0xff] }
  0x16   : > { %1097 = vmatprep.subr.mxu1 %v530_v11  ;;  %v522_v32 = vld [vmem:[%s1551_s3 + $0x18] sm:$0xff]  ;;  %v521_v33 = vld [vmem:[%s1551_s3 + $0x10] sm:$0xff]  ;;  %v519_v35 = vld [vmem:[%s1551_s3] sm:$0xff] }
  0x17   : > { %1098 = vmatpush3.msra.mxu1 %v530_v11  ;;  %v718_v36 = vld [vmem:[%s1553_s5 + $0x78] sm:$0xff]  ;;  %v717_v37 = vld [vmem:[%s1553_s5 + $0x70] sm:$0xff]  ;;  %v716_v38 = vld [vmem:[%s1553_s5 + $0x68] sm:$0xff] }
  0x18   : > { %1069 = vmatmul.mubr.msk.f32.gmra.mxu0 %vm309_vm0, %v285_v12  ;;  %1099 = vmatprep.subr.mxu1 %v529_v13  ;;  %v715_v39 = vld [vmem:[%s1553_s5 + $0x60] sm:$0xff]  ;;  %v1414_v40 = vld [vmem:[%s1553_s5 + $0x58] sm:$0xff]  ;;  %v1419_v41 = vld [vmem:[%s1553_s5 + $0x50] sm:$0xff] }
  0x19   : > { %1071 = vmatprep.mubr.msk.f32.mxu0 %vm309_vm0, %v286_v14  ;;  %1100 = vmatpush3.msra.mxu1 %v529_v13  ;;  %v1426_v42 = vld [vmem:[%s1553_s5 + $0x48] sm:$0xff]  ;;  %v1433_v43 = vld [vmem:[%s1553_s5 + $0x40] sm:$0xff]  ;;  %v1440_v44 = vld [vmem:[%s1553_s5 + $0x38] sm:$0xff] }
  0x1a   : > { %1101 = vmatprep.subr.mxu1 %v528_v15  ;;  %1145 = vmatprep.subr.mxu0 %v718_v36  ;;  %v1447_v45 = vld [vmem:[%s1553_s5 + $0x30] sm:$0xff]  ;;  %v1454_v46 = vld [vmem:[%s1553_s5 + $0x28] sm:$0xff]  ;;  %v1461_v47 = vld [vmem:[%s1553_s5 + $0x20] sm:$0xff] }
  0x1b   : > { %1102 = vmatpush3.msra.mxu1 %v528_v15  ;;  %1146 = vmatpush3.msra.mxu0 %v718_v36  ;;  %v1470_v48 = vld [vmem:[%s1550_s2] ss:$0 sm:$0xff] }
  0x1c   : > { %1072 = vmatmul.mubr.msk.f32.gmra.mxu0 %vm309_vm0, %v287_v16  ;;  %1103 = vmatprep.subr.mxu1 %v527_v17 }
  0x1d   : > { %1074 = vmatprep.mubr.msk.f32.mxu0 %vm309_vm0, %v288_v18  ;;  %1104 = vmatpush3.msra.mxu1 %v527_v17 }
  0x1e   : > { %1105 = vmatprep.subr.mxu1 %v526_v19  ;;  %1147 = vmatprep.subr.mxu0 %v717_v37 }
  0x1f   : > { %1106 = vmatpush3.msra.mxu1 %v526_v19  ;;  %1148 = vmatpush3.msra.mxu0 %v717_v37 }
  0x20   : > { %1075 = vmatmul.mubr.msk.f32.gmra.mxu0 %vm309_vm0, %v289_v20  ;;  %1107 = vmatprep.subr.mxu1 %v525_v21 }
  0x21   : > { %1077 = vmatprep.mubr.msk.f32.mxu0 %vm309_vm0, %v290_v22  ;;  %1108 = vmatpush3.msra.mxu1 %v525_v21 }
  0x22   : > { %1109 = vmatprep.subr.mxu1 %v524_v23  ;;  %1149 = vmatprep.subr.mxu0 %v716_v38 }
  0x23   : > { %1110 = vmatpush3.msra.mxu1 %v524_v23  ;;  %1150 = vmatpush3.msra.mxu0 %v716_v38 }
  0x24   : > { %1078 = vmatmul.mubr.msk.f32.gmra.mxu0 %vm309_vm0, %v291_v24  ;;  %1111 = vmatprep.subr.mxu1 %v523_v25 }
  0x25   : > { %1080 = vmatprep.mubr.msk.f32.mxu0 %vm309_vm0, %v292_v26  ;;  %1112 = vmatpush3.msra.mxu1 %v523_v25 }
  0x26   : > { %1113 = vmatprep.subr.mxu1 %v522_v32  ;;  %1151 = vmatprep.subr.mxu0 %v715_v39 }
  0x27   : > { %1114 = vmatpush3.msra.mxu1 %v522_v32  ;;  %1152 = vmatpush3.msra.mxu0 %v715_v39 }
  0x28   : > { %1081 = vmatmul.mubr.msk.f32.gmra.mxu0 %vm309_vm0, %v293_v27  ;;  %1115 = vmatprep.subr.mxu1 %v521_v33 }
  0x29   : > { %1083 = vmatprep.mubr.msk.f32.mxu0 %vm309_vm0, %v294_v28  ;;  %1116 = vmatpush3.msra.mxu1 %v521_v33  ;;  %v706_v33 = vld [vmem:[%s1553_s5 + $0x18] sm:$0xff] }
  0x2a   : > { %1117 = vmatprep.subr.mxu1 %v520_v34  ;;  %1153 = vmatprep.subr.mxu0 %v1414_v40 }
  0x2b   : > { %1118 = vmatpush3.msra.mxu1 %v520_v34  ;;  %1154 = vmatpush3.msra.mxu0 %v1414_v40  ;;  %v705_v34 = vld [vmem:[%s1553_s5 + $0x10] sm:$0xff] }
  0x2c   : > { %1084 = vmatmul.mubr.msk.f32.gmra.mxu0 %vm309_vm0, %v295_v29  ;;  %1119 = vmatprep.subr.mxu1 %v519_v35 }
  0x2d   : > { %1086 = vmatprep.mubr.msk.f32.mxu0 %vm309_vm0, %v296_v30  ;;  %1120 = vmatpush3.msra.mxu1 %v519_v35  ;;  %v704_v35 = vld [vmem:[%s1553_s5 + $0x8] sm:$0xff] }
  0x2e   : > { %1201 = vmatprep.subr.mxu1 %v718_v36  ;;  %1155 = vmatprep.subr.mxu0 %v1419_v41 }
  0x2f   : > { %1156 = vmatpush3.msra.mxu0 %v1419_v41 }
  0x30   : > { %1087 = vmatmul.mubr.msk.f32.gmra.mxu0 %vm309_vm0, %v297_v31  ;;  %1157 = vmatprep.subr.mxu0 %v1426_v42 }
  0x31   : > { %1158 = vmatpush3.msra.mxu0 %v1426_v42 }
  0x32   : > { %1159 = vmatprep.subr.mxu0 %v1433_v43 }
  0x33   : > { %1160 = vmatpush3.msra.mxu0 %v1433_v43 }
  0x34   : > { %1161 = vmatprep.subr.mxu0 %v1440_v44 }
  0x35   : > { %1162 = vmatpush3.msra.mxu0 %v1440_v44 }
  0x36   : > { %1163 = vmatprep.subr.mxu0 %v1447_v45 }
  0x37   : > { %1164 = vmatpush3.msra.mxu0 %v1447_v45 }
  0x38   : > { %1165 = vmatprep.subr.mxu0 %v1454_v46 }
  0x39   : > { %1166 = vmatpush3.msra.mxu0 %v1454_v46 }
  0x3a   : > { %1167 = vmatprep.subr.mxu0 %v1461_v47 }
  0x3b   : > { %1168 = vmatpush3.msra.mxu0 %v1461_v47 }
  0x3c   : > { %1169 = vmatprep.subr.mxu0 %v706_v33 }
  0x3d   : > { %1170 = vmatpush3.msra.mxu0 %v706_v33 }
  0x3e   : > { %1171 = vmatprep.subr.mxu0 %v705_v34 }
  0x3f   : > { %1172 = vmatpush3.msra.mxu0 %v705_v34 }
  0x40   : > { %1173 = vmatprep.subr.mxu0 %v704_v35 }
  0x41   : > { %1174 = vmatpush3.msra.mxu0 %v704_v35 }
  0xd4   : > { %v1067_v49 = vpop.f32.mrf.mxu0 }
  0xd5   : > { %v430_v50 = vadd.f32 %v1067_v49, %v1470_v48 }
  0xd6   : > { %v424_v51 = vpop.f32.mrf.mxu0 }
  0xd7   : > { %v425_v52 = vadd.f32 %v1470_v48, %v424_v51  ;;  %v504_v55 = vmax.f32 %v430_v50, 0.0 }
  0xd8   : > { %v1070_v53 = vpop.f32.mrf.mxu0 }
  0xd9   : > { %v503_v54 = vmax.f32 %v425_v52, 0.0  ;;  %v440_v56 = vadd.f32 %v1070_v53, %v1470_v48 }
  0xda   : > { %v434_v57 = vpop.f32.mrf.mxu0 }
  0xdb   : > { %v435_v58 = vadd.f32 %v1470_v48, %v434_v57  ;;  %1121 = vmatprep.mubr.f32.mxu1 %v503_v54  ;;  %v506_v61 = vmax.f32 %v440_v56, 0.0 }
  0xdc   : > { %v1073_v59 = vpop.f32.mrf.mxu0  ;;  %1122 = vmatmul.mubr.f32.vlgmr.msra.gmra.mxu1 %v504_v55 }
  0xdd   : > { %v505_v60 = vmax.f32 %v435_v58, 0.0  ;;  %1217 = vmatpush3.msra.mxu1 %v718_v36  ;;  %v450_v62 = vadd.f32 %v1073_v59, %v1470_v48  ;;  %v703_v36 = vld [vmem:[%s1553_s5] sm:$0xff] }
  0xde   : > { %v444_v63 = vpop.f32.mrf.mxu0  ;;  %1202 = vmatprep.subr.mxu1 %v717_v37  ;;  %1175 = vmatprep.subr.mxu0 %v703_v36 }
  0xdf   : > { %v445_v0 = vadd.f32 %v1470_v48, %v444_v63  ;;  %1124 = vmatprep.mubr.f32.mxu1 %v505_v60  ;;  %1218 = vmatpush3.msra.mxu1 %v717_v37  ;;  %v508_v3 = vmax.f32 %v450_v62, 0.0  ;;  %v969_v37 = vld [vmem:[%s1552_s4] ss:$0 sm:$0xff] }
  0xe0   : > { %v1076_v1 = vpop.f32.mrf.mxu0  ;;  %1125 = vmatmul.mubr.f32.gmra.mxu1 %v506_v61  ;;  %1203 = vmatprep.subr.mxu1 %v716_v38 }
  0xe1   : > { %v507_v2 = vmax.f32 %v445_v0, 0.0  ;;  %1219 = vmatpush3.msra.mxu1 %v716_v38  ;;  %v460_v4 = vadd.f32 %v1076_v1, %v1470_v48  ;;  %1176 = vmatpush3.msra.mxu0 %v703_v36 }
  0xe2   : > { %v454_v5 = vpop.f32.mrf.mxu0  ;;  %1204 = vmatprep.subr.mxu1 %v715_v39 }
  0xe3   : > { %v455_v6 = vadd.f32 %v1470_v48, %v454_v5  ;;  %1127 = vmatprep.mubr.f32.mxu1 %v507_v2  ;;  %1220 = vmatpush3.msra.mxu1 %v715_v39  ;;  %v510_v9 = vmax.f32 %v460_v4, 0.0 }
  0xe4   : > { %v1079_v7 = vpop.f32.mrf.mxu0  ;;  %1128 = vmatmul.mubr.f32.gmra.mxu1 %v508_v3  ;;  %1205 = vmatprep.subr.mxu1 %v1414_v40 }
  0xe5   : > { %v509_v8 = vmax.f32 %v455_v6, 0.0  ;;  %1221 = vmatpush3.msra.mxu1 %v1414_v40  ;;  %v470_v10 = vadd.f32 %v1079_v7, %v1470_v48 }
  0xe6   : > { %v464_v11 = vpop.f32.mrf.mxu0  ;;  %1206 = vmatprep.subr.mxu1 %v1419_v41 }
  0xe7   : > { %v465_v12 = vadd.f32 %v1470_v48, %v464_v11  ;;  %1130 = vmatprep.mubr.f32.mxu1 %v509_v8  ;;  %1222 = vmatpush3.msra.mxu1 %v1419_v41  ;;  %v512_v15 = vmax.f32 %v470_v10, 0.0 }
  0xe8   : > { %v1082_v13 = vpop.f32.mrf.mxu0  ;;  %1131 = vmatmul.mubr.f32.gmra.mxu1 %v510_v9  ;;  %1207 = vmatprep.subr.mxu1 %v1426_v42 }
  0xe9   : > { %v511_v14 = vmax.f32 %v465_v12, 0.0  ;;  %1223 = vmatpush3.msra.mxu1 %v1426_v42  ;;  %v480_v16 = vadd.f32 %v1082_v13, %v1470_v48 }
  0xea   : > { %v474_v17 = vpop.f32.mrf.mxu0  ;;  %1208 = vmatprep.subr.mxu1 %v1433_v43 }
  0xeb   : > { %v475_v18 = vadd.f32 %v1470_v48, %v474_v17  ;;  %1133 = vmatprep.mubr.f32.mxu1 %v511_v14  ;;  %1224 = vmatpush3.msra.mxu1 %v1433_v43  ;;  %v514_v21 = vmax.f32 %v480_v16, 0.0 }
  0xec   : > { %v1085_v19 = vpop.f32.mrf.mxu0  ;;  %1134 = vmatmul.mubr.f32.gmra.mxu1 %v512_v15  ;;  %1209 = vmatprep.subr.mxu1 %v1440_v44 }
  0xed   : > { %v513_v20 = vmax.f32 %v475_v18, 0.0  ;;  %1225 = vmatpush3.msra.mxu1 %v1440_v44  ;;  %v490_v22 = vadd.f32 %v1085_v19, %v1470_v48 }
  0xee   : > { %v484_v23 = vpop.f32.mrf.mxu0  ;;  %1210 = vmatprep.subr.mxu1 %v1447_v45 }
  0xef   : > { %v485_v24 = vadd.f32 %v1470_v48, %v484_v23  ;;  %1136 = vmatprep.mubr.f32.mxu1 %v513_v20  ;;  %1226 = vmatpush3.msra.mxu1 %v1447_v45  ;;  %v516_v27 = vmax.f32 %v490_v22, 0.0  ;;  %v970_v22 = vld [vmem:[%s1554_s6] ss:$0 sm:$0xff] }
  0xf0   : > { %v1088_v25 = vpop.f32.mrf.mxu0  ;;  %1137 = vmatmul.mubr.f32.gmra.mxu1 %v514_v21  ;;  %1211 = vmatprep.subr.mxu1 %v1454_v46 }
  0xf1   : > { %v515_v26 = vmax.f32 %v485_v24, 0.0  ;;  %1227 = vmatpush3.msra.mxu1 %v1454_v46  ;;  %v500_v28 = vadd.f32 %v1088_v25, %v1470_v48 }
  0xf2   : > { %v494_v29 = vpop.f32.mrf.mxu0  ;;  %1212 = vmatprep.subr.mxu1 %v1461_v47 }
  0xf3   : > { %v495_v30 = vadd.f32 %v1470_v48, %v494_v29  ;;  %1139 = vmatprep.mubr.f32.mxu1 %v515_v26  ;;  %1228 = vmatpush3.msra.mxu1 %v1461_v47  ;;  %v518_v32 = vmax.f32 %v500_v28, 0.0 }
  0xf4   : > { %1140 = vmatmul.mubr.f32.gmra.mxu1 %v516_v27  ;;  %1213 = vmatprep.subr.mxu1 %v706_v33 }
  0xf5   : > { %v517_v31 = vmax.f32 %v495_v30, 0.0  ;;  %1229 = vmatpush3.msra.mxu1 %v706_v33 }
  0xf6   : > { %1214 = vmatprep.subr.mxu1 %v705_v34 }
  0xf7   : > { %1142 = vmatprep.mubr.f32.mxu1 %v517_v31  ;;  %1230 = vmatpush3.msra.mxu1 %v705_v34 }
  0xf8   : > { %1143 = vmatmul.mubr.f32.gmra.mxu1 %v518_v32  ;;  %1215 = vmatprep.subr.mxu1 %v704_v35 }
  0xf9   : > { %1231 = vmatpush3.msra.mxu1 %v704_v35 }
  0xfa   : > { %1216 = vmatprep.subr.mxu1 %v703_v36 }
  0xfb   : > { %1232 = vmatpush3.msra.mxu1 %v703_v36 }
 0x19c   : > { %v1123_v38 = vpop.f32.mrf.mxu1 }
 0x19d   : > { %v614_v39 = vadd.f32 %v1123_v38, %v969_v37 }
 0x19e   : > { %v608_v40 = vpop.f32.mrf.mxu1 }
 0x19f   : > { %v609_v41 = vadd.f32 %v969_v37, %v608_v40  ;;  %v688_v44 = vmax.f32 %v614_v39, 0.0 }
 0x1a0   : > { %v1126_v42 = vpop.f32.mrf.mxu1 }
 0x1a1   : > { %v687_v43 = vmax.f32 %v609_v41, 0.0  ;;  %v624_v45 = vadd.f32 %v1126_v42, %v969_v37 }
 0x1a2   : > { %v618_v46 = vpop.f32.mrf.mxu1 }
 0x1a3   : > { %v619_v47 = vadd.f32 %v969_v37, %v618_v46  ;;  %1177 = vmatprep.mubr.f32.mxu0 %v687_v43  ;;  %v690_v50 = vmax.f32 %v624_v45, 0.0 }
 0x1a4   : > { %v1129_v48 = vpop.f32.mrf.mxu1  ;;  %1178 = vmatmul.mubr.f32.vlgmr.msra.gmra.mxu0 %v688_v44 }
 0x1a5   : > { %v689_v49 = vmax.f32 %v619_v47, 0.0  ;;  %v634_v51 = vadd.f32 %v1129_v48, %v969_v37 }
 0x1a6   : > { %v628_v52 = vpop.f32.mrf.mxu1 }
 0x1a7   : > { %v629_v53 = vadd.f32 %v969_v37, %v628_v52  ;;  %1180 = vmatprep.mubr.f32.mxu0 %v689_v49  ;;  %v692_v56 = vmax.f32 %v634_v51, 0.0 }
 0x1a8   : > { %v1132_v54 = vpop.f32.mrf.mxu1  ;;  %1181 = vmatmul.mubr.f32.gmra.mxu0 %v690_v50 }
 0x1a9   : > { %v691_v55 = vmax.f32 %v629_v53, 0.0  ;;  %v644_v57 = vadd.f32 %v1132_v54, %v969_v37 }
 0x1aa   : > { %v638_v58 = vpop.f32.mrf.mxu1 }
 0x1ab   : > { %v639_v59 = vadd.f32 %v969_v37, %v638_v58  ;;  %1183 = vmatprep.mubr.f32.mxu0 %v691_v55  ;;  %v694_v62 = vmax.f32 %v644_v57, 0.0 }
 0x1ac   : > { %v1135_v60 = vpop.f32.mrf.mxu1  ;;  %1184 = vmatmul.mubr.f32.gmra.mxu0 %v692_v56 }
 0x1ad   : > { %v693_v61 = vmax.f32 %v639_v59, 0.0  ;;  %v654_v63 = vadd.f32 %v1135_v60, %v969_v37 }
 0x1ae   : > { %v648_v0 = vpop.f32.mrf.mxu1 }
 0x1af   : > { %v649_v1 = vadd.f32 %v969_v37, %v648_v0  ;;  %1186 = vmatprep.mubr.f32.mxu0 %v693_v61  ;;  %v696_v4 = vmax.f32 %v654_v63, 0.0 }
 0x1b0   : > { %v1138_v2 = vpop.f32.mrf.mxu1  ;;  %1187 = vmatmul.mubr.f32.gmra.mxu0 %v694_v62 }
 0x1b1   : > { %v695_v3 = vmax.f32 %v649_v1, 0.0  ;;  %v664_v5 = vadd.f32 %v1138_v2, %v969_v37 }
 0x1b2   : > { %v658_v6 = vpop.f32.mrf.mxu1 }
 0x1b3   : > { %v659_v7 = vadd.f32 %v969_v37, %v658_v6  ;;  %1189 = vmatprep.mubr.f32.mxu0 %v695_v3  ;;  %v698_v10 = vmax.f32 %v664_v5, 0.0 }
 0x1b4   : > { %v1141_v8 = vpop.f32.mrf.mxu1  ;;  %1190 = vmatmul.mubr.f32.gmra.mxu0 %v696_v4 }
 0x1b5   : > { %v697_v9 = vmax.f32 %v659_v7, 0.0  ;;  %v674_v11 = vadd.f32 %v1141_v8, %v969_v37 }
 0x1b6   : > { %v668_v12 = vpop.f32.mrf.mxu1 }
 0x1b7   : > { %v669_v13 = vadd.f32 %v969_v37, %v668_v12  ;;  %1192 = vmatprep.mubr.f32.mxu0 %v697_v9  ;;  %v700_v16 = vmax.f32 %v674_v11, 0.0 }
 0x1b8   : > { %v1144_v14 = vpop.f32.mrf.mxu1  ;;  %1193 = vmatmul.mubr.f32.gmra.mxu0 %v698_v10 }
 0x1b9   : > { %v699_v15 = vmax.f32 %v669_v13, 0.0  ;;  %v684_v17 = vadd.f32 %v1144_v14, %v969_v37 }
 0x1ba   : > { %v678_v18 = vpop.f32.mrf.mxu1 }
 0x1bb   : > { %v679_v19 = vadd.f32 %v969_v37, %v678_v18  ;;  %1195 = vmatprep.mubr.f32.mxu0 %v699_v15  ;;  %v702_v21 = vmax.f32 %v684_v17, 0.0 }
 0x1bc   : > { %1196 = vmatmul.mubr.f32.gmra.mxu0 %v700_v16 }
 0x1bd   : > { %v701_v20 = vmax.f32 %v679_v19, 0.0 }
 0x1bf   : > { %1198 = vmatprep.mubr.f32.mxu1 %v701_v20 }
 0x1c0   : > { %1199 = vmatmul.mubr.f32.vlgmr.msra.gmra.mxu1 %v702_v21 }
 0x264   : > { %v1179_v23 = vpop.f32.mrf.mxu0 }
 0x265   : > { %v798_v24 = vadd.f32 %v1179_v23, %v970_v22 }
 0x266   : > { %v792_v25 = vpop.f32.mrf.mxu0 }
 0x267   : > { %872 = vst [vmem:[%s1527_s29 + $0x8] sm:$0xff] %v798_v24  ;;  %v793_v26 = vadd.f32 %v970_v22, %v792_v25 }
 0x268   : > { %v1182_v27 = vpop.f32.mrf.mxu0 }
 0x269   : > { %871 = vst [vmem:[%s1527_s29] sm:$0xff] %v793_v26  ;;  %v808_v28 = vadd.f32 %v1182_v27, %v970_v22 }
 0x26a   : > { %v802_v29 = vpop.f32.mrf.mxu0 }
 0x26b   : > { %874 = vst [vmem:[%s1527_s29 + $0x18] sm:$0xff] %v808_v28  ;;  %v803_v30 = vadd.f32 %v970_v22, %v802_v29 }
 0x26c   : > { %v1185_v31 = vpop.f32.mrf.mxu0 }
 0x26d   : > { %873 = vst [vmem:[%s1527_s29 + $0x10] sm:$0xff] %v803_v30  ;;  %v818_v32 = vadd.f32 %v1185_v31, %v970_v22 }
 0x26e   : > { %v812_v33 = vpop.f32.mrf.mxu0 }
 0x26f   : > { %876 = vst [vmem:[%s1527_s29 + $0x28] sm:$0xff] %v818_v32  ;;  %v813_v34 = vadd.f32 %v970_v22, %v812_v33 }
 0x270   : > { %v1188_v35 = vpop.f32.mrf.mxu0 }
 0x271   : > { %875 = vst [vmem:[%s1527_s29 + $0x20] sm:$0xff] %v813_v34  ;;  %v828_v36 = vadd.f32 %v1188_v35, %v970_v22 }
 0x272   : > { %v822_v37 = vpop.f32.mrf.mxu0 }
 0x273   : > { %878 = vst [vmem:[%s1527_s29 + $0x38] sm:$0xff] %v828_v36  ;;  %v823_v38 = vadd.f32 %v970_v22, %v822_v37 }
 0x274   : > { %v1191_v39 = vpop.f32.mrf.mxu0 }
 0x275   : > { %877 = vst [vmem:[%s1527_s29 + $0x30] sm:$0xff] %v823_v38  ;;  %v838_v40 = vadd.f32 %v1191_v39, %v970_v22 }
 0x276   : > { %v832_v41 = vpop.f32.mrf.mxu0 }
 0x277   : > { %880 = vst [vmem:[%s1527_s29 + $0x48] sm:$0xff] %v838_v40  ;;  %v833_v42 = vadd.f32 %v970_v22, %v832_v41 }
 0x278   : > { %v1194_v43 = vpop.f32.mrf.mxu0 }
 0x279   : > { %879 = vst [vmem:[%s1527_s29 + $0x40] sm:$0xff] %v833_v42  ;;  %v848_v44 = vadd.f32 %v1194_v43, %v970_v22 }
 0x27a   : > { %v842_v45 = vpop.f32.mrf.mxu0 }
 0x27b   : > { %882 = vst [vmem:[%s1527_s29 + $0x58] sm:$0xff] %v848_v44  ;;  %v843_v46 = vadd.f32 %v970_v22, %v842_v45 }
 0x27c   : > { %v1197_v47 = vpop.f32.mrf.mxu0 }
 0x27d   : > { %881 = vst [vmem:[%s1527_s29 + $0x50] sm:$0xff] %v843_v46  ;;  %v858_v48 = vadd.f32 %v1197_v47, %v970_v22 }
 0x27e   : > { %v852_v49 = vpop.f32.mrf.mxu0 }
 0x27f   : > { %884 = vst [vmem:[%s1527_s29 + $0x68] sm:$0xff] %v858_v48  ;;  %v853_v50 = vadd.f32 %v970_v22, %v852_v49 }
 0x280   : > { %v1200_v51 = vpop.f32.mrf.mxu1 }
 0x281   : > { %883 = vst [vmem:[%s1527_s29 + $0x60] sm:$0xff] %v853_v50  ;;  %v868_v52 = vadd.f32 %v1200_v51, %v970_v22 }
 0x282   : > { %v862_v53 = vpop.f32.mrf.mxu1 }
 0x283   : > { %886 = vst [vmem:[%s1527_s29 + $0x78] sm:$0xff] %v868_v52  ;;  %v863_v54 = vadd.f32 %v970_v22, %v862_v53 }
 0x285   : > { %885 = vst [vmem:[%s1527_s29 + $0x70] sm:$0xff] %v863_v54 }
 0x286 PF: > { %s17_s24 = sadd.s32 1, %s1247_s24  }
 0x287   : > { %p14_p4 = scmp.ge.s32.totalorder %s17_s24, 4  }
 0x289   :  { %16 = sbr.rel (!%p14_p4) target bundleno = 1 (0x1), region = 78 }

</bundles_post_ra>
